<compile_context>
chip_gen: v5e
topology: v5e:2x2
jax: 0.10.0
libtpu: 0.0.40
codegen_flags: <defaults>
</compile_context>

<pallas_src>
import jax
import jax.numpy as jnp
from jax.experimental import pallas as pl
from jax.experimental.pallas import tpu as pltpu

BN_EPS = 1e-5  # PyTorch BatchNorm1d default


def _round_up(a, b):
    return ((a + b - 1) // b) * b


# ---------------------------------------------------------------------------
# Kernel: encoder (2 matmuls) + classifier (3 matmuls, BN folded) + ReLUs.
# One grid axis over batch tiles; all weights resident in VMEM.
# ---------------------------------------------------------------------------
def _classifier_ae_kernel(
    x_ref,
    we1_ref, be1_ref, we2_ref, be2_ref,     # encoder
    w1_ref, b1_ref,                         # Linear(enc_pad, 256)  (BN1 folded in)
    w2_ref, b2_ref,                         # Linear(256, 128)      (BN2 folded in)
    w3_ref, b3_ref,                         # Linear(128, C_pad)
    out_ref,
):
    cd = we1_ref.dtype  # compute (matmul-operand) dtype, e.g. bf16

    # ---- encoder ----
    h = jnp.dot(x_ref[...], we1_ref[...], preferred_element_type=jnp.float32)
    h = jnp.maximum(h + be1_ref[...], 0.0)
    enc = jnp.dot(h.astype(cd), we2_ref[...], preferred_element_type=jnp.float32)
    enc = jnp.maximum(enc + be2_ref[...], 0.0)

    # ---- classifier block 1: Linear (+ folded BN) -> ReLU -> Dropout(identity, eval) ----
    z1 = jnp.dot(enc.astype(cd), w1_ref[...], preferred_element_type=jnp.float32)
    z1 = jnp.maximum(z1 + b1_ref[...], 0.0)

    # ---- classifier block 2: Linear (+ folded BN) -> ReLU -> Dropout(identity, eval) ----
    z2 = jnp.dot(z1.astype(cd), w2_ref[...], preferred_element_type=jnp.float32)
    z2 = jnp.maximum(z2 + b2_ref[...], 0.0)

    # ---- final Linear(128, C_pad) — lane-dense unmasked bf16 store ----
    logits = (
        jnp.dot(z2.astype(cd), w3_ref[...], preferred_element_type=jnp.float32)
        + b3_ref[...]
    )
    out_ref[...] = logits.astype(out_ref.dtype)


# ---------------------------------------------------------------------------
# One-time parameter preparation (amortized across calls):
#   - fold BatchNorm into the preceding Linear (eval-mode running stats)
#   - zero-pad input_dim / encoding_size / num_classes lane dims to x128
#   - cast matmul weights to bf16 (biases stay f32)
# ---------------------------------------------------------------------------
def prepare_params(raw, *, compute_dtype=jnp.bfloat16, eps=BN_EPS):
    f32 = jnp.float32

    def fold_bn(w, b, g, bt, rm, rv):
        s = g * jax.lax.rsqrt(rv + eps)            # (1, N), folded in f32
        return w * s, (b - rm) * s + bt            # folded weight / bias

    w1f, b1f = fold_bn(raw["w1"], raw["b1"], raw["g1"], raw["bt1"], raw["rm1"], raw["rv1"])
    w2f, b2f = fold_bn(raw["w2"], raw["b2"], raw["g2"], raw["bt2"], raw["rm2"], raw["rv2"])

    input_dim = raw["we1"].shape[0]
    encoding_size = raw["we2"].shape[1]
    num_classes = raw["w3"].shape[1]
    in_pad = _round_up(input_dim, 128) - input_dim
    enc_pad = _round_up(encoding_size, 128) - encoding_size
    cls_pad = _round_up(num_classes, 128) - num_classes

    we1 = jnp.pad(raw["we1"], ((0, in_pad), (0, 0)))     # zero rows match padded x cols
    we2 = jnp.pad(raw["we2"], ((0, 0), (0, enc_pad)))
    be2 = jnp.pad(raw["be2"], ((0, 0), (0, enc_pad)))
    w1f = jnp.pad(w1f, ((0, enc_pad), (0, 0)))           # zero rows match zero enc cols
    w3 = jnp.pad(raw["w3"], ((0, 0), (0, cls_pad)))
    b3 = jnp.pad(raw["b3"], ((0, 0), (0, cls_pad)))

    cd = compute_dtype
    return {
        "we1": we1.astype(cd),        "be1": raw["be1"].astype(f32),
        "we2": we2.astype(cd),        "be2": be2.astype(f32),
        "w1": w1f.astype(cd),         "b1": b1f.astype(f32),
        "w2": w2f.astype(cd),         "b2": b2f.astype(f32),
        "w3": w3.astype(cd),          "b3": b3.astype(f32),
        "input_dim": input_dim,
        "num_classes": num_classes,
    }


# ---------------------------------------------------------------------------
# Batch-tile selection:
#   - small batches: one tile == padded batch (no waste, minimal overhead)
#   - large batches: biggest of {2048,1024,512,256,128} that still gives a grid
#     of >= 2 steps (so v7x's two TensorCores both run) and minimal batch padding.
# ---------------------------------------------------------------------------
def _choose_tm(padded_rows, requested=None):
    if requested is not None:
        return max(16, min(_round_up(requested, 16), padded_rows))
    if padded_rows <= 512:
        return padded_rows
    cap = max(128, padded_rows // 2)
    cands = [c for c in (2048, 1024, 512, 256, 128) if c <= cap] or [128]
    # minimize padding waste; break ties toward the larger tile
    return min(cands, key=lambda c: (_round_up(padded_rows, c) - padded_rows, -c))


# ---------------------------------------------------------------------------
# Wrapper: tile batch into a parallel grid axis, keep weights resident.
# ---------------------------------------------------------------------------
def classifier_with_autoencoder(x, prep, *, tm=None, out_dtype=jnp.float32):
    batch, input_dim = x.shape
    assert input_dim == prep["input_dim"]
    num_classes = prep["num_classes"]

    cd = prep["we1"].dtype
    d_pad = prep["we1"].shape[0]        # input_dim rounded up to x128
    c_pad = prep["w3"].shape[1]         # num_classes rounded up to x128

    rows16 = _round_up(batch, 16)       # sublane-safe for bf16 tiles
    tm = _choose_tm(rows16, tm)
    padded_batch = _round_up(rows16, tm)

    # Pad batch rows + input lanes and cast to bf16 in one expression
    # (fuses with the producer of x under jit).
    x = jnp.pad(x, ((0, padded_batch - batch), (0, d_pad - input_dim))).astype(cd)

    grid = (padded_batch // tm,)

    weights = (
        prep["we1"], prep["be1"], prep["we2"], prep["be2"],
        prep["w1"], prep["b1"], prep["w2"], prep["b2"],
        prep["w3"], prep["b3"],
    )

    x_spec = pl.BlockSpec((tm, d_pad), lambda i: (i, 0))
    # Constant index_map -> same block every iteration -> stays VMEM-resident.
    w_specs = [pl.BlockSpec(w.shape, lambda i: (0, 0)) for w in weights]
    out_spec = pl.BlockSpec((tm, c_pad), lambda i: (i, 0))

    # Cost estimate (padded dims) so XLA schedules sensibly around the call.
    flops = 2 * padded_batch * sum(
        int(prep[k].shape[0]) * int(prep[k].shape[1])
        for k in ("we1", "we2", "w1", "w2", "w3")
    )
    out_itemsize = jnp.dtype(cd).itemsize
    bytes_accessed = (
        x.size * x.dtype.itemsize
        + sum(int(w.size) * w.dtype.itemsize for w in weights)
        + padded_batch * c_pad * out_itemsize
    )

    # Only raise the scoped-VMEM limit when big tiles / wide inputs need it
    # (v5e default is 16 MiB); stay None otherwise so small shapes are safe
    # on every TPU generation.
    enc_h = prep["we1"].shape[1]
    enc_p = prep["we2"].shape[1]
    h1 = prep["w1"].shape[1]
    h2 = prep["w2"].shape[1]
    vmem_est = (
        2 * tm * (d_pad + c_pad) * out_itemsize                      # x/out double buffers
        + 2 * sum(int(w.size) * w.dtype.itemsize for w in weights)   # resident weights (2 bufs)
        + tm * (enc_h + enc_p + h1 + h2 + c_pad) * 4                 # f32 intermediates
    )
    vmem_limit = None
    if vmem_est > 12 * 1024 * 1024:
        vmem_limit = min(int(vmem_est * 2), 96 * 1024 * 1024)

    out = pl.pallas_call(
        _classifier_ae_kernel,
        out_shape=jax.ShapeDtypeStruct((padded_batch, c_pad), cd),   # bf16 writeback
        grid_spec=pltpu.PrefetchScalarGridSpec(
            num_scalar_prefetch=0,
            grid=grid,
            in_specs=[x_spec] + w_specs,
            out_specs=out_spec,
        ),
        compiler_params=pltpu.CompilerParams(
            dimension_semantics=("parallel",),
            vmem_limit_bytes=vmem_limit,
        ),
        cost_estimate=pl.CostEstimate(
            flops=int(flops), transcendentals=0, bytes_accessed=int(bytes_accessed)
        ),
    )(x, *weights)

    # Slice padding off and upcast outside the kernel.
    return out[:batch, :num_classes].astype(out_dtype)


# ---------------------------------------------------------------------------
# Parameter construction and pure-JAX references.
# ---------------------------------------------------------------------------
def _make_params(key, input_dim, enc_hidden, encoding_size, num_classes):
    ks = jax.random.split(key, 16)
    f32 = jnp.float32

    def w(k, shape, scale=0.1):
        return (scale * jax.random.normal(k, shape)).astype(f32)

    return {
        # encoder: Linear(input_dim, enc_hidden), Linear(enc_hidden, encoding_size)
        "we1": w(ks[0], (input_dim, enc_hidden)),
        "be1": w(ks[1], (1, enc_hidden)),
        "we2": w(ks[2], (enc_hidden, encoding_size)),
        "be2": w(ks[3], (1, encoding_size)),
        # classifier Linear(encoding_size, 256) + BN(256)
        "w1": w(ks[4], (encoding_size, 256)),
        "b1": w(ks[5], (1, 256)),
        "g1": jnp.ones((1, 256), f32),
        "bt1": jnp.zeros((1, 256), f32),
        "rm1": w(ks[6], (1, 256), scale=0.05),
        "rv1": jnp.abs(w(ks[7], (1, 256))) + 1.0,
        # classifier Linear(256, 128) + BN(128)
        "w2": w(ks[8], (256, 128)),
        "b2": w(ks[9], (1, 128)),
        "g2": jnp.ones((1, 128), f32),
        "bt2": jnp.zeros((1, 128), f32),
        "rm2": w(ks[10], (1, 128), scale=0.05),
        "rv2": jnp.abs(w(ks[11], (1, 128))) + 1.0,
        # classifier Linear(128, num_classes)
        "w3": w(ks[12], (128, num_classes)),
        "b3": w(ks[13], (1, num_classes)),
    }


def _reference_raw(x, p):
    """Eval-mode PyTorch semantics in pure f32 (unfolded BN, unpadded)."""
    relu = lambda v: jnp.maximum(v, 0.0)
    h = relu(x @ p["we1"] + p["be1"])
    enc = relu(h @ p["we2"] + p["be2"])
    z1 = enc @ p["w1"] + p["b1"]
    z1 = relu((z1 - p["rm1"]) * jax.lax.rsqrt(p["rv1"] + BN_EPS) * p["g1"] + p["bt1"])
    z2 = z1 @ p["w2"] + p["b2"]
    z2 = relu((z2 - p["rm2"]) * jax.lax.rsqrt(p["rv2"] + BN_EPS) * p["g2"] + p["bt2"])
    return z2 @ p["w3"] + p["b3"]


def _reference_prepared(x, prep):
    """Same math as the kernel (bf16 operands, f32 acc, folded/padded, bf16 out)."""
    cd = prep["we1"].dtype
    d_pad = prep["we1"].shape[0]
    xp = jnp.pad(x, ((0, 0), (0, d_pad - x.shape[1])))
    dot = lambda a, b: jnp.dot(a.astype(cd), b, preferred_element_type=jnp.float32)
    relu = lambda v: jnp.maximum(v, 0.0)
    h = relu(dot(xp, prep["we1"]) + prep["be1"])
    enc = relu(dot(h, prep["we2"]) + prep["be2"])
    z1 = relu(dot(enc, prep["w1"]) + prep["b1"])
    z2 = relu(dot(z1, prep["w2"]) + prep["b2"])
    logits = (dot(z2, prep["w3"]) + prep["b3"]).astype(cd).astype(jnp.float32)
    return logits[:, : prep["num_classes"]]


if __name__ == "__main__":
    # Small, forward-consistent shapes.
    batch, input_dim = 8, 64
    enc_hidden, encoding_size, num_classes = 128, 32, 10

    key = jax.random.PRNGKey(0)
    k_x, k_p = jax.random.split(key)
    x = jax.random.normal(k_x, (batch, input_dim), dtype=jnp.float32)

    raw = _make_params(k_p, input_dim, enc_hidden, encoding_size, num_classes)
    prep = prepare_params(raw)

    # jit so the wrapper's pad/cast fuses with the producer of x.
    fwd = jax.jit(lambda xx: classifier_with_autoencoder(xx, prep))
    out = jax.block_until_ready(fwd(x))
    assert out.shape == (batch, num_classes)

    # Exact-semantics check (same bf16 operands / f32 accumulation / bf16 store).
    ref_exact = _reference_prepared(x, prep)
    assert jnp.allclose(out, ref_exact, atol=5e-3, rtol=5e-3), "mismatch vs prepared-param reference"

    # End-to-end check vs f32 eval-mode PyTorch semantics (bf16 rounding tolerance).
    ref_full = _reference_raw(x, raw)
    assert jnp.allclose(out, ref_full, atol=3e-2, rtol=5e-2), "mismatch vs f32 reference"

    # TODO(synk): Dropout is stochastic in training mode and BatchNorm would use
    # batch statistics; this kernel implements standard inference (eval) semantics.
    print("KERNEL_OK")
</pallas_src>

<mosaic_0001>
module attributes {stable_mosaic.version = 11 : i64} {
  func.func @_classifier_ae_kernel(%arg0: i32, %arg1: memref<16x128xbf16, #tpu.memory_space<vmem>>, %arg2: memref<128x128xbf16, #tpu.memory_space<vmem>>, %arg3: memref<1x128xf32, #tpu.memory_space<vmem>>, %arg4: memref<128x128xbf16, #tpu.memory_space<vmem>>, %arg5: memref<1x128xf32, #tpu.memory_space<vmem>>, %arg6: memref<128x256xbf16, #tpu.memory_space<vmem>>, %arg7: memref<1x256xf32, #tpu.memory_space<vmem>>, %arg8: memref<256x128xbf16, #tpu.memory_space<vmem>>, %arg9: memref<1x128xf32, #tpu.memory_space<vmem>>, %arg10: memref<128x128xbf16, #tpu.memory_space<vmem>>, %arg11: memref<1x128xf32, #tpu.memory_space<vmem>>, %arg12: memref<16x128xbf16, #tpu.memory_space<vmem>>) attributes {dimension_semantics = [#tpu.dimension_semantics<parallel>], iteration_bounds = array<i64: 1>, scalar_prefetch = 0 : i64, scratch_operands = 0 : i64, tpu.core_type = #tpu.core_type<tc>, window_params = [{transform_indices = @transform_0, window_bounds = array<i64: 16, 128>}, {pipeline_mode = #tpu.pipeline_mode<synchronous>, transform_indices = @transform_1, window_bounds = array<i64: 128, 128>}, {pipeline_mode = #tpu.pipeline_mode<synchronous>, transform_indices = @transform_2, window_bounds = array<i64: 1, 128>}, {pipeline_mode = #tpu.pipeline_mode<synchronous>, transform_indices = @transform_3, window_bounds = array<i64: 128, 128>}, {pipeline_mode = #tpu.pipeline_mode<synchronous>, transform_indices = @transform_4, window_bounds = array<i64: 1, 128>}, {pipeline_mode = #tpu.pipeline_mode<synchronous>, transform_indices = @transform_5, window_bounds = array<i64: 128, 256>}, {pipeline_mode = #tpu.pipeline_mode<synchronous>, transform_indices = @transform_6, window_bounds = array<i64: 1, 256>}, {pipeline_mode = #tpu.pipeline_mode<synchronous>, transform_indices = @transform_7, window_bounds = array<i64: 256, 128>}, {pipeline_mode = #tpu.pipeline_mode<synchronous>, transform_indices = @transform_8, window_bounds = array<i64: 1, 128>}, {pipeline_mode = #tpu.pipeline_mode<synchronous>, transform_indices = @transform_9, window_bounds = array<i64: 128, 128>}, {pipeline_mode = #tpu.pipeline_mode<synchronous>, transform_indices = @transform_10, window_bounds = array<i64: 1, 128>}, {transform_indices = @transform_11, window_bounds = array<i64: 16, 128>}]} {
    %c0 = arith.constant 0 : index
    %c0_0 = arith.constant 0 : index
    %0 = vector.load %arg1[%c0, %c0_0] : memref<16x128xbf16, #tpu.memory_space<vmem>>, vector<16x128xbf16>
    %c0_1 = arith.constant 0 : index
    %c0_2 = arith.constant 0 : index
    %1 = vector.load %arg2[%c0_1, %c0_2] : memref<128x128xbf16, #tpu.memory_space<vmem>>, vector<128x128xbf16>
    %cst = arith.constant dense<0.000000e+00> : vector<16x128xf32>
    %2 = tpu.matmul %0, %1, %cst {dimension_numbers = #tpu.dot_dimension_numbers<[1], [0], [0], [1], [0, 0, 1, 1], [], []>} : vector<16x128xbf16>, vector<128x128xbf16>, vector<16x128xf32> -> vector<16x128xf32>
    %c0_3 = arith.constant 0 : index
    %c0_4 = arith.constant 0 : index
    %3 = vector.load %arg3[%c0_3, %c0_4] : memref<1x128xf32, #tpu.memory_space<vmem>>, vector<1x128xf32>
    %4 = vector.broadcast %3 : vector<1x128xf32> to vector<16x128xf32>
    %5 = arith.addf %2, %4 : vector<16x128xf32>
    %cst_5 = arith.constant 0.000000e+00 : f32
    %6 = vector.broadcast %cst_5 : f32 to vector<16x128xf32>
    %7 = arith.maximumf %5, %6 : vector<16x128xf32>
    %8 = arith.truncf %7 : vector<16x128xf32> to vector<16x128xbf16>
    %c0_6 = arith.constant 0 : index
    %c0_7 = arith.constant 0 : index
    %9 = vector.load %arg4[%c0_6, %c0_7] : memref<128x128xbf16, #tpu.memory_space<vmem>>, vector<128x128xbf16>
    %cst_8 = arith.constant dense<0.000000e+00> : vector<16x128xf32>
    %10 = tpu.matmul %8, %9, %cst_8 {dimension_numbers = #tpu.dot_dimension_numbers<[1], [0], [0], [1], [0, 0, 1, 1], [], []>} : vector<16x128xbf16>, vector<128x128xbf16>, vector<16x128xf32> -> vector<16x128xf32>
    %c0_9 = arith.constant 0 : index
    %c0_10 = arith.constant 0 : index
    %11 = vector.load %arg5[%c0_9, %c0_10] : memref<1x128xf32, #tpu.memory_space<vmem>>, vector<1x128xf32>
    %12 = vector.broadcast %11 : vector<1x128xf32> to vector<16x128xf32>
    %13 = arith.addf %10, %12 : vector<16x128xf32>
    %cst_11 = arith.constant 0.000000e+00 : f32
    %14 = vector.broadcast %cst_11 : f32 to vector<16x128xf32>
    %15 = arith.maximumf %13, %14 : vector<16x128xf32>
    %16 = arith.truncf %15 : vector<16x128xf32> to vector<16x128xbf16>
    %c0_12 = arith.constant 0 : index
    %c0_13 = arith.constant 0 : index
    %17 = vector.load %arg6[%c0_12, %c0_13] : memref<128x256xbf16, #tpu.memory_space<vmem>>, vector<128x256xbf16>
    %cst_14 = arith.constant dense<0.000000e+00> : vector<16x256xf32>
    %18 = tpu.matmul %16, %17, %cst_14 {dimension_numbers = #tpu.dot_dimension_numbers<[1], [0], [0], [1], [0, 0, 1, 1], [], []>} : vector<16x128xbf16>, vector<128x256xbf16>, vector<16x256xf32> -> vector<16x256xf32>
    %c0_15 = arith.constant 0 : index
    %c0_16 = arith.constant 0 : index
    %19 = vector.load %arg7[%c0_15, %c0_16] : memref<1x256xf32, #tpu.memory_space<vmem>>, vector<1x256xf32>
    %20 = vector.broadcast %19 : vector<1x256xf32> to vector<16x256xf32>
    %21 = arith.addf %18, %20 : vector<16x256xf32>
    %cst_17 = arith.constant 0.000000e+00 : f32
    %22 = vector.broadcast %cst_17 : f32 to vector<16x256xf32>
    %23 = arith.maximumf %21, %22 : vector<16x256xf32>
    %24 = arith.truncf %23 : vector<16x256xf32> to vector<16x256xbf16>
    %c0_18 = arith.constant 0 : index
    %c0_19 = arith.constant 0 : index
    %25 = vector.load %arg8[%c0_18, %c0_19] : memref<256x128xbf16, #tpu.memory_space<vmem>>, vector<256x128xbf16>
    %cst_20 = arith.constant dense<0.000000e+00> : vector<16x128xf32>
    %26 = tpu.matmul %24, %25, %cst_20 {dimension_numbers = #tpu.dot_dimension_numbers<[1], [0], [0], [1], [0, 0, 1, 1], [], []>} : vector<16x256xbf16>, vector<256x128xbf16>, vector<16x128xf32> -> vector<16x128xf32>
    %c0_21 = arith.constant 0 : index
    %c0_22 = arith.constant 0 : index
    %27 = vector.load %arg9[%c0_21, %c0_22] : memref<1x128xf32, #tpu.memory_space<vmem>>, vector<1x128xf32>
    %28 = vector.broadcast %27 : vector<1x128xf32> to vector<16x128xf32>
    %29 = arith.addf %26, %28 : vector<16x128xf32>
    %cst_23 = arith.constant 0.000000e+00 : f32
    %30 = vector.broadcast %cst_23 : f32 to vector<16x128xf32>
    %31 = arith.maximumf %29, %30 : vector<16x128xf32>
    %32 = arith.truncf %31 : vector<16x128xf32> to vector<16x128xbf16>
    %c0_24 = arith.constant 0 : index
    %c0_25 = arith.constant 0 : index
    %33 = vector.load %arg10[%c0_24, %c0_25] : memref<128x128xbf16, #tpu.memory_space<vmem>>, vector<128x128xbf16>
    %cst_26 = arith.constant dense<0.000000e+00> : vector<16x128xf32>
    %34 = tpu.matmul %32, %33, %cst_26 {dimension_numbers = #tpu.dot_dimension_numbers<[1], [0], [0], [1], [0, 0, 1, 1], [], []>} : vector<16x128xbf16>, vector<128x128xbf16>, vector<16x128xf32> -> vector<16x128xf32>
    %c0_27 = arith.constant 0 : index
    %c0_28 = arith.constant 0 : index
    %35 = vector.load %arg11[%c0_27, %c0_28] : memref<1x128xf32, #tpu.memory_space<vmem>>, vector<1x128xf32>
    %36 = vector.broadcast %35 : vector<1x128xf32> to vector<16x128xf32>
    %37 = arith.addf %34, %36 : vector<16x128xf32>
    %38 = arith.truncf %37 : vector<16x128xf32> to vector<16x128xbf16>
    %c0_29 = arith.constant 0 : index
    %c0_30 = arith.constant 0 : index
    %39 = vector.load %arg12[%c0_29, %c0_30] : memref<16x128xbf16, #tpu.memory_space<vmem>>, vector<16x128xbf16>
    tpu.vector_store %arg12[%c0_29, %c0_30], %38 {strides = array<i32>} : memref<16x128xbf16, #tpu.memory_space<vmem>>, vector<16x128xbf16>,
    return
  }
  func.func @transform_0(%arg0: i32) -> (i32, i32) {
    %c0_i32 = arith.constant 0 : i32
    %c0_i32_0 = arith.constant 0 : i32
    return %arg0, %c0_i32 : i32, i32
  }
  func.func @transform_1(%arg0: i32) -> (i32, i32) {
    %c0_i32 = arith.constant 0 : i32
    %c0_i32_0 = arith.constant 0 : i32
    %c0_i32_1 = arith.constant 0 : i32
    return %c0_i32, %c0_i32_0 : i32, i32
  }
  func.func @transform_2(%arg0: i32) -> (i32, i32) {
    %c0_i32 = arith.constant 0 : i32
    %c0_i32_0 = arith.constant 0 : i32
    %c0_i32_1 = arith.constant 0 : i32
    return %c0_i32, %c0_i32_0 : i32, i32
  }
  func.func @transform_3(%arg0: i32) -> (i32, i32) {
    %c0_i32 = arith.constant 0 : i32
    %c0_i32_0 = arith.constant 0 : i32
    %c0_i32_1 = arith.constant 0 : i32
    return %c0_i32, %c0_i32_0 : i32, i32
  }
  func.func @transform_4(%arg0: i32) -> (i32, i32) {
    %c0_i32 = arith.constant 0 : i32
    %c0_i32_0 = arith.constant 0 : i32
    %c0_i32_1 = arith.constant 0 : i32
    return %c0_i32, %c0_i32_0 : i32, i32
  }
  func.func @transform_5(%arg0: i32) -> (i32, i32) {
    %c0_i32 = arith.constant 0 : i32
    %c0_i32_0 = arith.constant 0 : i32
    %c0_i32_1 = arith.constant 0 : i32
    return %c0_i32, %c0_i32_0 : i32, i32
  }
  func.func @transform_6(%arg0: i32) -> (i32, i32) {
    %c0_i32 = arith.constant 0 : i32
    %c0_i32_0 = arith.constant 0 : i32
    %c0_i32_1 = arith.constant 0 : i32
    return %c0_i32, %c0_i32_0 : i32, i32
  }
  func.func @transform_7(%arg0: i32) -> (i32, i32) {
    %c0_i32 = arith.constant 0 : i32
    %c0_i32_0 = arith.constant 0 : i32
    %c0_i32_1 = arith.constant 0 : i32
    return %c0_i32, %c0_i32_0 : i32, i32
  }
  func.func @transform_8(%arg0: i32) -> (i32, i32) {
    %c0_i32 = arith.constant 0 : i32
    %c0_i32_0 = arith.constant 0 : i32
    %c0_i32_1 = arith.constant 0 : i32
    return %c0_i32, %c0_i32_0 : i32, i32
  }
  func.func @transform_9(%arg0: i32) -> (i32, i32) {
    %c0_i32 = arith.constant 0 : i32
    %c0_i32_0 = arith.constant 0 : i32
    %c0_i32_1 = arith.constant 0 : i32
    return %c0_i32, %c0_i32_0 : i32, i32
  }
  func.func @transform_10(%arg0: i32) -> (i32, i32) {
    %c0_i32 = arith.constant 0 : i32
    %c0_i32_0 = arith.constant 0 : i32
    %c0_i32_1 = arith.constant 0 : i32
    return %c0_i32, %c0_i32_0 : i32, i32
  }
  func.func @transform_11(%arg0: i32) -> (i32, i32) {
    %c0_i32 = arith.constant 0 : i32
    %c0_i32_0 = arith.constant 0 : i32
    return %arg0, %c0_i32 : i32, i32
  }
}

</mosaic_0001>

<bundles_post_ra>
// kernel: _lambda_.1
= control target key start
LH: loop header
LB: loop body
LE: loop exit
PB: predicated region body
PF: predicated region fallthrough
CT: control target
= control target key end

     0   :  { %16 = vsyncpa [#allocation3], 0  ;;  %s1232_s0 = inlined_call_operand.vmem [shape: bf16[16,128], index: 0, kind: input, shape index: {}]   ;;  %s1233_s1 = inlined_call_operand.hbm [shape: bf16[128,128], index: 1, kind: input, shape index: {}]   ;;  %s1234_s2 = inlined_call_operand.vmem [shape: f32[1,128], index: 2, kind: input, shape index: {}]   ;;  %s1235_s3 = inlined_call_operand.hbm [shape: bf16[128,128], index: 3, kind: input, shape index: {}]   ;;  %s1236_s4 = inlined_call_operand.vmem [shape: f32[1,128], index: 4, kind: input, shape index: {}]   ;;  %s1237_s5 = inlined_call_operand.hbm [shape: bf16[128,256], index: 5, kind: input, shape index: {}]   ;;  %s1238_s6 = inlined_call_operand.vmem [shape: f32[1,256], index: 6, kind: input, shape index: {}]   ;;  %s1239_s7 = inlined_call_operand.hbm [shape: bf16[256,128], index: 7, kind: input, shape index: {}]   ;;  %s1240_s8 = inlined_call_operand.vmem [shape: f32[1,128], index: 8, kind: input, shape index: {}]   ;;  %s1241_s9 = inlined_call_operand.hbm [shape: bf16[128,128], index: 9, kind: input, shape index: {}]   ;;  %s1242_s10 = inlined_call_operand.vmem [shape: f32[1,128], index: 10, kind: input, shape index: {}]   ;;  %s1243_s11 = inlined_call_operand.vmem [shape: bf16[16,128], index: 11, kind: output, shape index: {}]  }
   0x1   :  { %17 = vsyncpa [#allocation5], 0 }
   0x2   :  { %18 = vsyncpa [#allocation8], 0  ;;  %s40_s19 = sshll.u32 %s1235_s3, 4  ;;  %s1115_s20 = smov [#allocation4]   ;;  %s41_s19 = int_to_ptr.hbm [resolvable:$true] %s40_s19 }
   0x3   :  { %s42_s21 = sshll.u32 %s1115_s20, 4  ;;  %s70_s24 = sshll.u32 %s1239_s7, 4  ;;  %s43_s21 = int_to_ptr.vmem [resolvable:$true] %s42_s21  ;;  %s71_s24 = int_to_ptr.hbm [resolvable:$true] %s70_s24 }
   0x4   :  { %s1116_s25 = smov 64   ;;  %s1117_s26 = smov 4  }
   0x5   :  { %48 = dma.hbm_to_vmem [thread:$0]  %s41_s19, 1024, %s43_s21, [#allocation5], %s1116_s25, %s1116_s25, %s1117_s26  }
   0x6   :  { %s1118_s27 = smov [#allocation7]   ;;  %s25_s3 = sshll.u32 %s1233_s1, 4  ;;  %s26_s3 = int_to_ptr.hbm [resolvable:$true] %s25_s3 }
   0x7   :  { %s72_s28 = sshll.u32 %s1118_s27, 4  ;;  %s55_s13 = sshll.u32 %s1237_s5, 4  ;;  %s73_s28 = int_to_ptr.vmem [resolvable:$true] %s72_s28  ;;  %s56_s13 = int_to_ptr.hbm [resolvable:$true] %s55_s13 }
   0x8   :  { %78 = dma.hbm_to_vmem [thread:$0]  %s71_s24, 2048, %s73_s28, [#allocation8], %s1116_s25, %s1116_s25, %s1117_s26  }
   0x9   :  { %s1119_s14 = smov [#allocation2]   ;;  %s1120_s16 = smov [#allocation6]  }
   0xa   :  { %s27_s15 = sshll.u32 %s1119_s14, 4  ;;  %s57_s1 = sshll.u32 %s1120_s16, 4  ;;  %s28_s15 = int_to_ptr.vmem [resolvable:$true] %s27_s15  ;;  %s58_s1 = int_to_ptr.vmem [resolvable:$true] %s57_s1 }
   0xb   :  { %33 = dma.hbm_to_vmem [thread:$0]  %s26_s3, 1024, %s28_s15, [#allocation3], %s1116_s25, %s1116_s25, %s1117_s26  }
   0xc   :  { %s1121_s17 = smov 128   ;;  %s1122_s18 = smov 8  }
   0xd   :  { %63 = dma.hbm_to_vmem [thread:$0]  %s56_s13, 2048, %s58_s1, [#allocation5], %s1121_s17, %s1121_s17, %s1122_s18  }
   0xe   :  { %s85_s21 = sshll.u32 %s1241_s9, 4  ;;  %s1123_s5 = smov [#allocation9]   ;;  %s86_s21 = int_to_ptr.hbm [resolvable:$true] %s85_s21 }
   0xf   :  { %s87_s22 = sshll.u32 %s1123_s5, 4  ;;  %s88_s22 = int_to_ptr.vmem [resolvable:$true] %s87_s22 }
  0x10   :  { %93 = dma.hbm_to_vmem [thread:$0]  %s86_s21, 1024, %s88_s22, [#allocation8], %s1116_s25, %s1116_s25, %s1117_s26  }
  0x11   :  { %1109 = dma.done.wait [#allocation3], 1024  }
  0x12   :  { %1110 = vsyncadd [#allocation3], 4294966272 }
  0x13   :  { %1111 = dma.done.wait [#allocation5], 3072  }
  0x14   :  { %1112 = vsyncadd [#allocation5], 4294964224 }
  0x15   :  { %1113 = dma.done.wait [#allocation8], 3072  }
  0x16   :  { %1114 = vsyncadd [#allocation8], 4294964224  ;;  %v922_v0 = vld [vmem:[#allocation2 + $0x38] sm:$0xff]  ;;  %v921_v1 = vld [vmem:[#allocation2 + $0x30] sm:$0xff] }
  0x17   :  { %192 = vmatpush.bf16.msra.mxu0 %v922_v0  ;;  %v930_v2 = vld [vmem:[#allocation4 + $0x38] sm:$0xff]  ;;  %v929_v3 = vld [vmem:[#allocation4 + $0x30] sm:$0xff]  ;;  %v920_v4 = vld [vmem:[#allocation2 + $0x28] sm:$0xff] }
  0x18   :  { %277 = vmatpush.bf16.msra.mxu1 %v930_v2  ;;  %v928_v5 = vld [vmem:[#allocation4 + $0x28] sm:$0xff]  ;;  %v919_v6 = vld [vmem:[#allocation2 + $0x20] sm:$0xff]  ;;  %v918_v8 = vld [vmem:[#allocation2 + $0x18] sm:$0xff] }
  0x19   :  { %v927_v7 = vld [vmem:[#allocation4 + $0x20] sm:$0xff]  ;;  %v917_v9 = vld [vmem:[#allocation2 + $0x10] sm:$0xff]  ;;  %v916_v10 = vld [vmem:[#allocation2 + $0x8] sm:$0xff] }
  0x1a   :  { %v915_v11 = vld [vmem:[#allocation2] sm:$0xff]  ;;  %v926_v13 = vld [vmem:[#allocation4 + $0x18] sm:$0xff]  ;;  %v925_v14 = vld [vmem:[#allocation4 + $0x10] sm:$0xff] }
  0x1b   :  { %193 = vmatpush.bf16.msra.mxu0 %v921_v1  ;;  %v914_v12 = vld [vmem:[%s1232_s0] sm:$0xff]  ;;  %v924_v15 = vld [vmem:[#allocation4 + $0x8] sm:$0xff]  ;;  %v812_v17 = vld [vmem:[#allocation6 + $0x70] sm:$0xf] }
  0x1c   :  { %278 = vmatpush.bf16.msra.mxu1 %v929_v3  ;;  %v923_v16 = vld [vmem:[#allocation4] sm:$0xff]  ;;  %v946_v18 = vld [vmem:[#allocation6 + $0x74] sm:$0xf0]  ;;  %v945_v19 = vld [vmem:[#allocation6 + $0x74] sm:$0xf] }
  0x1d   :  { %v813_v20 = vor.u32 %v946_v18, %v812_v17  ;;  %v814_v21 = vld [vmem:[#allocation6 + $0x78] sm:$0xf0]  ;;  %v804_v22 = vld [vmem:[#allocation6 + $0x60] sm:$0xf]  ;;  %v944_v23 = vld [vmem:[#allocation6 + $0x64] sm:$0xf0] }
  0x1e   :  { %v817_v24 = vor.u32 %v945_v19, %v814_v21  ;;  %v943_v25 = vld [vmem:[#allocation6 + $0x64] sm:$0xf]  ;;  %v806_v26 = vld [vmem:[#allocation6 + $0x68] sm:$0xf0]  ;;  %v805_v27 = vor.u32 %v944_v23, %v804_v22  ;;  %v796_v29 = vld [vmem:[#allocation6 + $0x50] sm:$0xf] }
  0x1f   :  { %194 = vmatpush.bf16.msra.mxu0 %v920_v4  ;;  %396 = vmatpush.bf16.msra.mxu2 %v813_v20  ;;  %v809_v28 = vor.u32 %v943_v25, %v806_v26  ;;  %v942_v30 = vld [vmem:[#allocation6 + $0x54] sm:$0xf0]  ;;  %v941_v31 = vld [vmem:[#allocation6 + $0x54] sm:$0xf]  ;;  %v798_v32 = vld [vmem:[#allocation6 + $0x58] sm:$0xf0] }
  0x20   :  { %279 = vmatpush.bf16.msra.mxu1 %v928_v5  ;;  %410 = vmatpush.bf16.msra.mxu3 %v817_v24  ;;  %v797_v33 = vor.u32 %v942_v30, %v796_v29  ;;  %v801_v34 = vor.u32 %v941_v31, %v798_v32  ;;  %v788_v35 = vld [vmem:[#allocation6 + $0x40] sm:$0xf]  ;;  %v940_v36 = vld [vmem:[#allocation6 + $0x44] sm:$0xf0]  ;;  %v939_v37 = vld [vmem:[#allocation6 + $0x44] sm:$0xf] }
  0x21   :  { %v790_v38 = vld [vmem:[#allocation6 + $0x48] sm:$0xf0]  ;;  %v789_v39 = vor.u32 %v940_v36, %v788_v35  ;;  %v985_v42 = vld [vmem:[%s1234_s2] ss:$0 sm:$0xff]  ;;  %v780_v49 = vld [vmem:[#allocation6 + $0x30] sm:$0xf] }
  0x22   :  { %v793_v40 = vor.u32 %v939_v37, %v790_v38  ;;  %v938_v50 = vld [vmem:[#allocation6 + $0x34] sm:$0xf0]  ;;  %v937_v51 = vld [vmem:[#allocation6 + $0x34] sm:$0xf]  ;;  %v782_v53 = vld [vmem:[#allocation6 + $0x38] sm:$0xf0] }
  0x23   :  { %195 = vmatpush.bf16.msra.mxu0 %v919_v6  ;;  %397 = vmatpush.bf16.msra.mxu2 %v805_v27  ;;  %v781_v52 = vor.u32 %v938_v50, %v780_v49  ;;  %v785_v54 = vor.u32 %v937_v51, %v782_v53  ;;  %v772_v55 = vld [vmem:[#allocation6 + $0x20] sm:$0xf]  ;;  %v936_v56 = vld [vmem:[#allocation6 + $0x24] sm:$0xf0]  ;;  %v935_v57 = vld [vmem:[#allocation6 + $0x24] sm:$0xf] }
  0x24   :  { %280 = vmatpush.bf16.msra.mxu1 %v927_v7  ;;  %411 = vmatpush.bf16.msra.mxu3 %v809_v28  ;;  %v773_v58 = vor.u32 %v936_v56, %v772_v55  ;;  %v774_v59 = vld [vmem:[#allocation6 + $0x28] sm:$0xf0]  ;;  %v764_v61 = vld [vmem:[#allocation6 + $0x10] sm:$0xf]  ;;  %v934_v62 = vld [vmem:[#allocation6 + $0x14] sm:$0xf0] }
  0x25   :  { %v777_v60 = vor.u32 %v935_v57, %v774_v59  ;;  %v933_v63 = vld [vmem:[#allocation6 + $0x14] sm:$0xf]  ;;  %v765_v0 = vor.u32 %v934_v62, %v764_v61  ;;  %v766_v1 = vld [vmem:[#allocation6 + $0x18] sm:$0xf0]  ;;  %v756_v3 = vld [vmem:[#allocation6] sm:$0xf] }
  0x26   :  { %v769_v2 = vor.u32 %v933_v63, %v766_v1  ;;  %v932_v4 = vld [vmem:[#allocation6 + $0x4] sm:$0xf0]  ;;  %v931_v5 = vld [vmem:[#allocation6 + $0x4] sm:$0xf]  ;;  %v758_v7 = vld [vmem:[#allocation6 + $0x8] sm:$0xf0] }
  0x27   :  { %196 = vmatpush.bf16.msra.mxu0 %v918_v8  ;;  %398 = vmatpush.bf16.msra.mxu2 %v797_v33  ;;  %v757_v6 = vor.u32 %v932_v4, %v756_v3  ;;  %v761_v8 = vor.u32 %v931_v5, %v758_v7  ;;  %v986_v18 = vld [vmem:[%s1236_s4] ss:$0 sm:$0xff]  ;;  %v950_v25 = vld [vmem:[#allocation7 + $0x18] sm:$0xff]  ;;  %v949_v27 = vld [vmem:[#allocation7 + $0x10] sm:$0xff] }
  0x28   :  { %281 = vmatpush.bf16.msra.mxu1 %v926_v13  ;;  %412 = vmatpush.bf16.msra.mxu3 %v801_v34  ;;  %v952_v13 = vld [vmem:[#allocation7 + $0x28] sm:$0xff]  ;;  %v958_v26 = vld [vmem:[#allocation7 + $0x58] sm:$0xff]  ;;  %v957_v28 = vld [vmem:[#allocation7 + $0x50] sm:$0xff] }
  0x29   :  { %v948_v29 = vld [vmem:[#allocation7 + $0x8] sm:$0xff]  ;;  %v947_v31 = vld [vmem:[#allocation7] sm:$0xff]  ;;  %v970_v33 = vld [vmem:[#allocation9 + $0x38] sm:$0xff] }
  0x2a   :  { %v956_v30 = vld [vmem:[#allocation7 + $0x48] sm:$0xff]  ;;  %v955_v32 = vld [vmem:[#allocation7 + $0x40] sm:$0xff]  ;;  %v969_v34 = vld [vmem:[#allocation9 + $0x30] sm:$0xff] }
  0x2b   :  { %197 = vmatpush.bf16.msra.mxu0 %v917_v9  ;;  %399 = vmatpush.bf16.msra.mxu2 %v789_v39  ;;  %v954_v9 = vld [vmem:[#allocation7 + $0x38] sm:$0xff]  ;;  %v968_v35 = vld [vmem:[#allocation9 + $0x28] sm:$0xff]  ;;  %v967_v36 = vld [vmem:[#allocation9 + $0x20] sm:$0xff] }
  0x2c   :  { %282 = vmatpush.bf16.msra.mxu1 %v925_v14  ;;  %413 = vmatpush.bf16.msra.mxu3 %v793_v40  ;;  %v960_v14 = vld [vmem:[#allocation7 + $0x68] sm:$0xff]  ;;  %v310_v37 = vld [vmem:[%s1238_s6] sm:$0x3]  ;;  %v965_v55 = vld [vmem:[#allocation9 + $0x10] sm:$0xff] }
  0x2d   :  { %v312_v40 = vperm.slane %v310_v37, 0  ;;  %v964_v56 = vld [vmem:[#allocation9 + $0x8] sm:$0xff]  ;;  %v963_v57 = vld [vmem:[#allocation9] sm:$0xff] }
  0x2e   :  { %v988_v7 = vld [vmem:[%s1242_s10] ss:$0 sm:$0xff] }
  0x2f   :  { %198 = vmatpush.bf16.msra.mxu0 %v916_v10  ;;  %400 = vmatpush.bf16.msra.mxu2 %v781_v52  ;;  %v962_v10 = vld [vmem:[#allocation7 + $0x78] sm:$0xff] }
  0x30   :  { %283 = vmatpush.bf16.msra.mxu1 %v924_v15  ;;  %414 = vmatpush.bf16.msra.mxu3 %v785_v54  ;;  %v951_v15 = vld [vmem:[#allocation7 + $0x20] sm:$0xff]  ;;  %v966_v54 = vld [vmem:[#allocation9 + $0x18] sm:$0xff] }
  0x33   :  { %199 = vmatpush.bf16.msra.mxu0 %v915_v11  ;;  %401 = vmatpush.bf16.msra.mxu2 %v773_v58  ;;  %v953_v11 = vld [vmem:[#allocation7 + $0x30] sm:$0xff] }
  0x34   :  { %284 = vmatpush.bf16.msra.mxu1 %v923_v16  ;;  %415 = vmatpush.bf16.msra.mxu3 %v777_v60  ;;  %v959_v16 = vld [vmem:[#allocation7 + $0x60] sm:$0xff] }
  0x35   :  { %v987_v60 = vld [vmem:[%s1240_s8] ss:$0 sm:$0xff] }
  0x36   :  { %200 = vmatmul.bf16.vlgmr.msra.gmra.mxu0 %v914_v12  ;;  %v961_v12 = vld [vmem:[#allocation7 + $0x70] sm:$0xff] }
  0x37   :  { %402 = vmatpush.bf16.msra.mxu2 %v765_v0  ;;  %562 = vmatpush.bf16.msrb.mxu0 %v954_v9 }
  0x38   :  { %416 = vmatpush.bf16.msra.mxu3 %v769_v2  ;;  %576 = vmatpush.bf16.msrb.mxu1 %v962_v10 }
  0x3b   :  { %403 = vmatpush.bf16.msra.mxu2 %v757_v6  ;;  %563 = vmatpush.bf16.msrb.mxu0 %v953_v11 }
  0x3c   :  { %417 = vmatpush.bf16.msra.mxu3 %v761_v8  ;;  %577 = vmatpush.bf16.msrb.mxu1 %v961_v12 }
  0x3f   :  { %564 = vmatpush.bf16.msrb.mxu0 %v952_v13  ;;  %661 = vmatpush.bf16.msrb.mxu2 %v970_v33 }
  0x40   :  { %578 = vmatpush.bf16.msrb.mxu1 %v960_v14 }
  0x43   :  { %565 = vmatpush.bf16.msrb.mxu0 %v951_v15  ;;  %662 = vmatpush.bf16.msrb.mxu2 %v969_v34 }
  0x44   :  { %579 = vmatpush.bf16.msrb.mxu1 %v959_v16 }
  0x47   :  { %566 = vmatpush.bf16.msrb.mxu0 %v950_v25  ;;  %663 = vmatpush.bf16.msrb.mxu2 %v968_v35 }
  0x48   :  { %580 = vmatpush.bf16.msrb.mxu1 %v958_v26 }
  0x4b   :  { %567 = vmatpush.bf16.msrb.mxu0 %v949_v27  ;;  %664 = vmatpush.bf16.msrb.mxu2 %v967_v36 }
  0x4c   :  { %581 = vmatpush.bf16.msrb.mxu1 %v957_v28 }
  0x4f   :  { %568 = vmatpush.bf16.msrb.mxu0 %v948_v29  ;;  %665 = vmatpush.bf16.msrb.mxu2 %v966_v54 }
  0x50   :  { %582 = vmatpush.bf16.msrb.mxu1 %v956_v30 }
  0x53   :  { %569 = vmatpush.bf16.msrb.mxu0 %v947_v31  ;;  %666 = vmatpush.bf16.msrb.mxu2 %v965_v55 }
  0x54   :  { %583 = vmatpush.bf16.msrb.mxu1 %v955_v32 }
  0x57   :  { %667 = vmatpush.bf16.msrb.mxu2 %v964_v56 }
  0x5b   :  { %668 = vmatpush.bf16.msrb.mxu2 %v963_v57 }
  0xb3   :  { %v201_v41 = vpop.f32.mrf.mxu0 }
  0xb4   :  { %v202_v43 = vadd.f32 %v985_v42, %v201_v41  ;;  %v313_v41 = vperm.slane %v310_v37, 1 }
  0xb6   :  { %v206_v46 = vmax.f32 %v202_v43, 0.0 }
  0xbb   :  { %v203_v44 = vpop.f32.mrf.mxu0 }
  0xbc   :  { %v204_v45 = vadd.f32 %v985_v42, %v203_v44 }
  0xbe   :  { %v207_v47 = vmax.f32 %v204_v45, 0.0 }
  0xc0   :  { %v208_v48 = vpack.c.bf16 %v207_v47, %v206_v46 }
  0xc2   :  { %285 = vmatmul.bf16.vlgmr.msra.gmra.mxu1 %v208_v48 }
 0x13f   :  { %v286_v17 = vpop.f32.mrf.mxu1 }
 0x140   :  { %v287_v19 = vadd.f32 %v986_v18, %v286_v17 }
 0x142   :  { %v291_v22 = vmax.f32 %v287_v19, 0.0 }
 0x147   :  { %v288_v20 = vpop.f32.mrf.mxu1 }
 0x148   :  { %v289_v21 = vadd.f32 %v986_v18, %v288_v20 }
 0x14a   :  { %v292_v23 = vmax.f32 %v289_v21, 0.0 }
 0x14c   :  { %v293_v24 = vpack.c.bf16 %v292_v23, %v291_v22 }
 0x14e   :  { %404 = vmatmul.bf16.vlgmr.msra.gmra.mxu2 %v293_v24  ;;  %418 = vmatmul.bf16.vlgmr.msra.gmra.mxu3 %v293_v24 }
 0x1d1   :  { %v405_v38 = vpop.f32.mrf.mxu2  ;;  %v419_v39 = vpop.f32.mrf.mxu3 }
 0x1d2   :  { %v406_v42 = vadd.f32 %v405_v38, %v312_v40  ;;  %v420_v43 = vadd.f32 %v419_v39, %v313_v41 }
 0x1d4   :  { %v424_v48 = vmax.f32 %v406_v42, 0.0  ;;  %v425_v49 = vmax.f32 %v420_v43, 0.0 }
 0x1d9   :  { %v407_v44 = vpop.f32.mrf.mxu2  ;;  %v421_v45 = vpop.f32.mrf.mxu3 }
 0x1da   :  { %v408_v46 = vadd.f32 %v407_v44, %v312_v40  ;;  %v422_v47 = vadd.f32 %v421_v45, %v313_v41 }
 0x1dc   :  { %v426_v50 = vmax.f32 %v408_v46, 0.0  ;;  %v427_v51 = vmax.f32 %v422_v47, 0.0 }
 0x1de   :  { %v428_v52 = vpack.c.bf16 %v426_v50, %v424_v48  ;;  %v429_v53 = vpack.c.bf16 %v427_v51, %v425_v49 }
 0x1e0   :  { %570 = vmatmul.bf16.vlgmr.msrb.gmra.mxu0 %v428_v52  ;;  %584 = vmatmul.bf16.vlgmr.msrb.gmra.mxu1 %v429_v53 }
 0x25d   :  { %v571_v58 = vpop.f32.mrf.mxu0  ;;  %v585_v59 = vpop.f32.mrf.mxu1 }
 0x25e   :  { %v572_v61 = vadd.f32 %v987_v60, %v571_v58 }
 0x260   :  { %v586_v63 = vadd.f32 %v585_v59, %v572_v61 }
 0x262   :  { %v590_v3 = vmax.f32 %v586_v63, 0.0 }
 0x265   :  { %v573_v62 = vpop.f32.mrf.mxu0  ;;  %v587_v1 = vpop.f32.mrf.mxu1 }
 0x266   :  { %v574_v0 = vadd.f32 %v987_v60, %v573_v62 }
 0x268   :  { %v588_v2 = vadd.f32 %v587_v1, %v574_v0 }
 0x26a   :  { %v591_v4 = vmax.f32 %v588_v2, 0.0 }
 0x26c   :  { %v592_v5 = vpack.c.bf16 %v591_v4, %v590_v3 }
 0x26e   :  { %669 = vmatmul.bf16.vlgmr.msrb.gmra.mxu2 %v592_v5 }
 0x2f1   :  { %v670_v6 = vpop.f32.mrf.mxu2 }
 0x2f2   :  { %v671_v9 = vadd.f32 %v988_v7, %v670_v6 }
 0x2f9   :  { %v672_v8 = vpop.f32.mrf.mxu2 }
 0x2fa   :  { %v673_v10 = vadd.f32 %v988_v7, %v672_v8 }
 0x2fc   :  { %v974_v11 = vpack.c.bf16 %v673_v10, %v671_v9 }
 0x2fe   :  { %975 = vst [vmem:[%s1243_s11] sm:$0xff] %v974_v11  }
 0x2ff   :  { %683 = vsyncpa [#allocation3], 1 }
 0x300   :  { %684 = vsyncpa [#allocation5], 1 }
 0x301   :  { %685 = vsyncpa [#allocation8], 1 }

</bundles_post_ra>
